<compile_context>
chip_gen: v7x
topology: tpu7x:2x2x1
jax: 0.10.0
libtpu: 0.0.40
codegen_flags: <defaults>
</compile_context>

<pallas_src>
import functools
import math

import jax
import jax.numpy as jnp
from jax.experimental import pallas as pl
from jax.experimental.pallas import tpu as pltpu

LOG_STD_MAX = 2.0
LOG_STD_MIN = -20.0
LOG_SQRT_2PI = 0.5 * math.log(2.0 * math.pi)


def _softplus(z):
    # numerically stable softplus (kept over log1p(-tanh^2): better for |a| large)
    return jnp.maximum(z, 0.0) + jnp.log1p(jnp.exp(-jnp.abs(z)))


def _round_up(n, m):
    return ((n + m - 1) // m) * m


def _actor_kernel(x_ref, noise_ref,
                  w1_ref, b1_ref, w2_ref, b2_ref, w3_ref, b3_ref,
                  wh_ref, bh_ref,
                  out_ref,
                  *, act_dim, max_action, forced_exploration,
                  deterministic, with_logprob):
    A = act_dim

    # MLP trunk: bf16 MXU operands, f32 accumulate + f32 elementwise
    xb = x_ref[...].astype(jnp.bfloat16)
    h = jnp.maximum(
        jnp.dot(xb, w1_ref[...], preferred_element_type=jnp.float32)
        + b1_ref[...], 0.0)
    h = jnp.maximum(
        jnp.dot(h.astype(jnp.bfloat16), w2_ref[...],
                preferred_element_type=jnp.float32) + b2_ref[...], 0.0)
    h = jnp.maximum(
        jnp.dot(h.astype(jnp.bfloat16), w3_ref[...],
                preferred_element_type=jnp.float32) + b3_ref[...], 0.0)

    # Fused mu / log_std head: one [256, 2A] matmul, then lane slice.
    head = (jnp.dot(h.astype(jnp.bfloat16), wh_ref[...],
                    preferred_element_type=jnp.float32) + bh_ref[...])
    mu = head[:, :A]
    log_std = jnp.clip(head[:, A:] - 1.0, LOG_STD_MIN, LOG_STD_MAX)
    std = jnp.exp(log_std) * forced_exploration

    if deterministic:
        pi_action = mu
    else:
        # Normal(mu, std).rsample() with externally supplied standard normals
        pi_action = mu + std * noise_ref[...]

    # Fused output: columns [0, A) = squashed action, column A = logp.
    out_ref[:, :A] = (max_action * jnp.tanh(pi_action)).astype(out_ref.dtype)

    if with_logprob:
        # z = (pi - mu)/std == noise (0 if deterministic);
        # log(std) == log_std + log(forced_exploration)  -> no divide, no vector log
        if deterministic:
            half_z2 = jnp.zeros_like(log_std)
        else:
            n = noise_ref[...]
            half_z2 = 0.5 * n * n
        log_fe = math.log(forced_exploration)
        gauss_logp = -half_z2 - log_std - (LOG_SQRT_2PI + log_fe)
        logp = jnp.sum(gauss_logp, axis=-1, keepdims=True)
        # tanh-squash correction: 2*(log 2 - a - softplus(-2a)) summed over action dim
        corr = 2.0 * (math.log(2.0) - pi_action - _softplus(-2.0 * pi_action))
        logp = logp - jnp.sum(corr, axis=-1, keepdims=True)
        out_ref[:, A:] = logp.astype(out_ref.dtype)
    else:
        out_ref[:, A:] = jnp.zeros((out_ref.shape[0], 1), out_ref.dtype)


def pack_params(params):
    """Cast MXU weights to bf16 and fuse the mu / log_std heads (host side, once)."""
    bf16, f32 = jnp.bfloat16, jnp.float32
    return dict(
        w1=params["w1"].astype(bf16), b1=params["b1"].astype(f32),
        w2=params["w2"].astype(bf16), b2=params["b2"].astype(f32),
        w3=params["w3"].astype(bf16), b3=params["b3"].astype(f32),
        wh=jnp.concatenate([params["wmu"], params["wls"]], axis=1).astype(bf16),
        bh=jnp.concatenate([params["bmu"], params["bls"]], axis=1).astype(f32),
    )


def actor_forward(x, packed, noise, *, max_action, forced_exploration=1.0,
                  deterministic=False, with_logprob=True, block_b=512):
    B, in_dim = x.shape
    A = noise.shape[1]

    # Batch tile: multiple of 8 sublanes, capped so activations ([TB,256] f32)
    # and double-buffered I/O tiles stay well under v7x's 32 MiB scoped VMEM.
    TB = min(int(block_b), _round_up(B, 8))
    Bp = _round_up(B, TB)
    if Bp != B:
        pad = ((0, Bp - B), (0, 0))
        x = jnp.pad(x, pad)
        noise = jnp.pad(noise, pad)

    kernel = functools.partial(
        _actor_kernel,
        act_dim=A,
        max_action=float(max_action),
        forced_exploration=float(forced_exploration),
        deterministic=bool(deterministic),
        with_logprob=bool(with_logprob),
    )

    def resident(arr):
        # Block index never changes across the batch grid -> stays VMEM-resident.
        return pl.BlockSpec(arr.shape, lambda i: (0, 0))

    out = pl.pallas_call(
        kernel,
        out_shape=jax.ShapeDtypeStruct((Bp, A + 1), jnp.float32),
        grid_spec=pltpu.PrefetchScalarGridSpec(
            num_scalar_prefetch=0,
            grid=(Bp // TB,),
            in_specs=[
                pl.BlockSpec((TB, in_dim), lambda i: (i, 0)),
                pl.BlockSpec((TB, A), lambda i: (i, 0)),
                resident(packed["w1"]), resident(packed["b1"]),
                resident(packed["w2"]), resident(packed["b2"]),
                resident(packed["w3"]), resident(packed["b3"]),
                resident(packed["wh"]), resident(packed["bh"]),
            ],
            out_specs=pl.BlockSpec((TB, A + 1), lambda i: (i, 0)),
        ),
        compiler_params=pltpu.CompilerParams(
            dimension_semantics=("parallel",),
            vmem_limit_bytes=32 * 1024 * 1024,
        ),
    )(x, noise,
      packed["w1"], packed["b1"], packed["w2"], packed["b2"],
      packed["w3"], packed["b3"], packed["wh"], packed["bh"])

    pi = out[:B, :A]
    if with_logprob:
        return pi, out[:B, A]
    return pi


def _init_linear(key, fan_in, fan_out):
    # torch.nn.Linear default init: U(-1/sqrt(fan_in), 1/sqrt(fan_in))
    kw, kb = jax.random.split(key)
    bound = 1.0 / math.sqrt(fan_in)
    w = jax.random.uniform(kw, (fan_in, fan_out), jnp.float32, -bound, bound)
    b = jax.random.uniform(kb, (1, fan_out), jnp.float32, -bound, bound)
    return w, b


def make_params(key, obs, goal, action, hidden=256):
    in_dim = obs + goal
    keys = jax.random.split(key, 5)
    w1, b1 = _init_linear(keys[0], in_dim, hidden)
    w2, b2 = _init_linear(keys[1], hidden, hidden)
    w3, b3 = _init_linear(keys[2], hidden, hidden)
    wmu, bmu = _init_linear(keys[3], hidden, action)
    wls, bls = _init_linear(keys[4], hidden, action)
    return dict(w1=w1, b1=b1, w2=w2, b2=b2, w3=w3, b3=b3,
                wmu=wmu, bmu=bmu, wls=wls, bls=bls)


def _reference_forward(x, params, noise, *, max_action, forced_exploration=1.0,
                       deterministic=False, with_logprob=True):
    # Pure-JAX reference mirroring the kernel math (bf16 MXU operands,
    # f32 elsewhere, z == noise identity).
    def dot(a, w):
        return jnp.dot(a.astype(jnp.bfloat16), w.astype(jnp.bfloat16),
                       preferred_element_type=jnp.float32)
    h = jax.nn.relu(dot(x, params["w1"]) + params["b1"])
    h = jax.nn.relu(dot(h, params["w2"]) + params["b2"])
    h = jax.nn.relu(dot(h, params["w3"]) + params["b3"])
    mu = dot(h, params["wmu"]) + params["bmu"]
    log_std = jnp.clip(dot(h, params["wls"]) + params["bls"] - 1.0,
                       LOG_STD_MIN, LOG_STD_MAX)
    std = jnp.exp(log_std) * forced_exploration
    pi = mu if deterministic else mu + std * noise
    z = jnp.zeros_like(noise) if deterministic else noise
    logp = jnp.sum(-0.5 * z * z - log_std
                   - (LOG_SQRT_2PI + math.log(forced_exploration)), axis=-1)
    logp = logp - jnp.sum(
        2.0 * (math.log(2.0) - pi - jax.nn.softplus(-2.0 * pi)), axis=-1)
    pi = max_action * jnp.tanh(pi)
    if with_logprob:
        return pi, logp
    return pi


if __name__ == "__main__":
    env_params = {"obs": 10, "goal": 3, "action": 4, "action_max": 1.0}
    B = 8

    key = jax.random.PRNGKey(0)
    kp, kx, kn = jax.random.split(key, 3)

    params = make_params(kp, env_params["obs"], env_params["goal"],
                         env_params["action"])
    packed = pack_params(params)

    x = jax.random.normal(kx, (B, env_params["obs"] + env_params["goal"]),
                          jnp.float32)
    noise = jax.random.normal(kn, (B, env_params["action"]), jnp.float32)

    pi, logp = actor_forward(x, packed, noise,
                             max_action=env_params["action_max"],
                             forced_exploration=1.0,
                             deterministic=False,
                             with_logprob=True)
    jax.block_until_ready((pi, logp))

    pi_ref, logp_ref = _reference_forward(
        x, params, noise, max_action=env_params["action_max"],
        forced_exploration=1.0, deterministic=False, with_logprob=True)
    assert jnp.allclose(pi, pi_ref, atol=2e-3, rtol=2e-3), \
        float(jnp.max(jnp.abs(pi - pi_ref)))
    assert jnp.allclose(logp, logp_ref, atol=5e-3, rtol=5e-3), \
        float(jnp.max(jnp.abs(logp - logp_ref)))

    # deterministic / no-logprob path
    pi_det = actor_forward(x, packed, noise,
                           max_action=env_params["action_max"],
                           deterministic=True, with_logprob=False)
    pi_det_ref = _reference_forward(
        x, params, noise, max_action=env_params["action_max"],
        deterministic=True, with_logprob=False)
    jax.block_until_ready(pi_det)
    assert jnp.allclose(pi_det, pi_det_ref, atol=2e-3, rtol=2e-3)

    # a batch that exercises the batch grid (multiple tiles) and padding
    B2 = 1000
    x2 = jax.random.normal(kx, (B2, env_params["obs"] + env_params["goal"]),
                           jnp.float32)
    noise2 = jax.random.normal(kn, (B2, env_params["action"]), jnp.float32)
    pi2, logp2 = actor_forward(x2, packed, noise2,
                               max_action=env_params["action_max"],
                               with_logprob=True)
    jax.block_until_ready((pi2, logp2))
    pi2_ref, logp2_ref = _reference_forward(
        x2, params, noise2, max_action=env_params["action_max"],
        with_logprob=True)
    assert jnp.allclose(pi2, pi2_ref, atol=2e-3, rtol=2e-3)
    assert jnp.allclose(logp2, logp2_ref, atol=5e-3, rtol=5e-3)

    print("KERNEL_OK")
</pallas_src>

<mosaic_0001>
module attributes {stable_mosaic.version = 11 : i64} {
  func.func @_actor_kernel(%arg0: i32, %arg1: memref<8x13xf32, #tpu.memory_space<vmem>>, %arg2: memref<8x4xf32, #tpu.memory_space<vmem>>, %arg3: memref<13x256xbf16, #tpu.memory_space<vmem>>, %arg4: memref<1x256xf32, #tpu.memory_space<vmem>>, %arg5: memref<256x256xbf16, #tpu.memory_space<vmem>>, %arg6: memref<1x256xf32, #tpu.memory_space<vmem>>, %arg7: memref<256x256xbf16, #tpu.memory_space<vmem>>, %arg8: memref<1x256xf32, #tpu.memory_space<vmem>>, %arg9: memref<256x8xbf16, #tpu.memory_space<vmem>>, %arg10: memref<1x8xf32, #tpu.memory_space<vmem>>, %arg11: memref<8x5xf32, #tpu.memory_space<vmem>>) attributes {dimension_semantics = [#tpu.dimension_semantics<parallel>], iteration_bounds = array<i64: 1>, scalar_prefetch = 0 : i64, scratch_operands = 0 : i64, tpu.core_type = #tpu.core_type<tc>, window_params = [{transform_indices = @transform_0, window_bounds = array<i64: 8, 13>}, {transform_indices = @transform_1, window_bounds = array<i64: 8, 4>}, {pipeline_mode = #tpu.pipeline_mode<synchronous>, transform_indices = @transform_2, window_bounds = array<i64: 13, 256>}, {pipeline_mode = #tpu.pipeline_mode<synchronous>, transform_indices = @transform_3, window_bounds = array<i64: 1, 256>}, {pipeline_mode = #tpu.pipeline_mode<synchronous>, transform_indices = @transform_4, window_bounds = array<i64: 256, 256>}, {pipeline_mode = #tpu.pipeline_mode<synchronous>, transform_indices = @transform_5, window_bounds = array<i64: 1, 256>}, {pipeline_mode = #tpu.pipeline_mode<synchronous>, transform_indices = @transform_6, window_bounds = array<i64: 256, 256>}, {pipeline_mode = #tpu.pipeline_mode<synchronous>, transform_indices = @transform_7, window_bounds = array<i64: 1, 256>}, {pipeline_mode = #tpu.pipeline_mode<synchronous>, transform_indices = @transform_8, window_bounds = array<i64: 256, 8>}, {pipeline_mode = #tpu.pipeline_mode<synchronous>, transform_indices = @transform_9, window_bounds = array<i64: 1, 8>}, {transform_indices = @transform_10, window_bounds = array<i64: 8, 5>}]} {
    %c0 = arith.constant 0 : index
    %c0_0 = arith.constant 0 : index
    %0 = vector.load %arg1[%c0, %c0_0] : memref<8x13xf32, #tpu.memory_space<vmem>>, vector<8x13xf32>
    %1 = arith.truncf %0 : vector<8x13xf32> to vector<8x13xbf16>
    %c0_1 = arith.constant 0 : index
    %c0_2 = arith.constant 0 : index
    %2 = vector.load %arg3[%c0_1, %c0_2] : memref<13x256xbf16, #tpu.memory_space<vmem>>, vector<13x256xbf16>
    %cst = arith.constant dense<0.000000e+00> : vector<8x256xf32>
    %3 = tpu.matmul %1, %2, %cst {dimension_numbers = #tpu.dot_dimension_numbers<[1], [0], [0], [1], [0, 0, 1, 1], [], []>} : vector<8x13xbf16>, vector<13x256xbf16>, vector<8x256xf32> -> vector<8x256xf32>
    %c0_3 = arith.constant 0 : index
    %c0_4 = arith.constant 0 : index
    %4 = vector.load %arg4[%c0_3, %c0_4] : memref<1x256xf32, #tpu.memory_space<vmem>>, vector<1x256xf32>
    %5 = vector.broadcast %4 : vector<1x256xf32> to vector<8x256xf32>
    %6 = arith.addf %3, %5 : vector<8x256xf32>
    %cst_5 = arith.constant 0.000000e+00 : f32
    %7 = vector.broadcast %cst_5 : f32 to vector<8x256xf32>
    %8 = arith.maximumf %6, %7 : vector<8x256xf32>
    %9 = arith.truncf %8 : vector<8x256xf32> to vector<8x256xbf16>
    %c0_6 = arith.constant 0 : index
    %c0_7 = arith.constant 0 : index
    %10 = vector.load %arg5[%c0_6, %c0_7] : memref<256x256xbf16, #tpu.memory_space<vmem>>, vector<256x256xbf16>
    %cst_8 = arith.constant dense<0.000000e+00> : vector<8x256xf32>
    %11 = tpu.matmul %9, %10, %cst_8 {dimension_numbers = #tpu.dot_dimension_numbers<[1], [0], [0], [1], [0, 0, 1, 1], [], []>} : vector<8x256xbf16>, vector<256x256xbf16>, vector<8x256xf32> -> vector<8x256xf32>
    %c0_9 = arith.constant 0 : index
    %c0_10 = arith.constant 0 : index
    %12 = vector.load %arg6[%c0_9, %c0_10] : memref<1x256xf32, #tpu.memory_space<vmem>>, vector<1x256xf32>
    %13 = vector.broadcast %12 : vector<1x256xf32> to vector<8x256xf32>
    %14 = arith.addf %11, %13 : vector<8x256xf32>
    %cst_11 = arith.constant 0.000000e+00 : f32
    %15 = vector.broadcast %cst_11 : f32 to vector<8x256xf32>
    %16 = arith.maximumf %14, %15 : vector<8x256xf32>
    %17 = arith.truncf %16 : vector<8x256xf32> to vector<8x256xbf16>
    %c0_12 = arith.constant 0 : index
    %c0_13 = arith.constant 0 : index
    %18 = vector.load %arg7[%c0_12, %c0_13] : memref<256x256xbf16, #tpu.memory_space<vmem>>, vector<256x256xbf16>
    %cst_14 = arith.constant dense<0.000000e+00> : vector<8x256xf32>
    %19 = tpu.matmul %17, %18, %cst_14 {dimension_numbers = #tpu.dot_dimension_numbers<[1], [0], [0], [1], [0, 0, 1, 1], [], []>} : vector<8x256xbf16>, vector<256x256xbf16>, vector<8x256xf32> -> vector<8x256xf32>
    %c0_15 = arith.constant 0 : index
    %c0_16 = arith.constant 0 : index
    %20 = vector.load %arg8[%c0_15, %c0_16] : memref<1x256xf32, #tpu.memory_space<vmem>>, vector<1x256xf32>
    %21 = vector.broadcast %20 : vector<1x256xf32> to vector<8x256xf32>
    %22 = arith.addf %19, %21 : vector<8x256xf32>
    %cst_17 = arith.constant 0.000000e+00 : f32
    %23 = vector.broadcast %cst_17 : f32 to vector<8x256xf32>
    %24 = arith.maximumf %22, %23 : vector<8x256xf32>
    %25 = arith.truncf %24 : vector<8x256xf32> to vector<8x256xbf16>
    %c0_18 = arith.constant 0 : index
    %c0_19 = arith.constant 0 : index
    %26 = vector.load %arg9[%c0_18, %c0_19] : memref<256x8xbf16, #tpu.memory_space<vmem>>, vector<256x8xbf16>
    %cst_20 = arith.constant dense<0.000000e+00> : vector<8x8xf32>
    %27 = tpu.matmul %25, %26, %cst_20 {dimension_numbers = #tpu.dot_dimension_numbers<[1], [0], [0], [1], [0, 0, 1, 1], [], []>} : vector<8x256xbf16>, vector<256x8xbf16>, vector<8x8xf32> -> vector<8x8xf32>
    %c0_21 = arith.constant 0 : index
    %c0_22 = arith.constant 0 : index
    %28 = vector.load %arg10[%c0_21, %c0_22] : memref<1x8xf32, #tpu.memory_space<vmem>>, vector<1x8xf32>
    %29 = vector.broadcast %28 : vector<1x8xf32> to vector<8x8xf32>
    %30 = arith.addf %27, %29 : vector<8x8xf32>
    %31 = vector.extract_strided_slice %30 {offsets = [0, 0], sizes = [8, 4], strides = [1, 1]} : vector<8x8xf32> to vector<8x4xf32>
    %32 = vector.extract_strided_slice %30 {offsets = [0, 4], sizes = [8, 4], strides = [1, 1]} : vector<8x8xf32> to vector<8x4xf32>
    %cst_23 = arith.constant 1.000000e+00 : f32
    %33 = vector.broadcast %cst_23 : f32 to vector<8x4xf32>
    %34 = arith.subf %32, %33 : vector<8x4xf32>
    %cst_24 = arith.constant -2.000000e+01 : f32
    %cst_25 = arith.constant 2.000000e+00 : f32
    %35 = vector.broadcast %cst_24 : f32 to vector<8x4xf32>
    %36 = arith.maximumf %35, %34 : vector<8x4xf32>
    %37 = vector.broadcast %cst_25 : f32 to vector<8x4xf32>
    %38 = arith.minimumf %37, %36 : vector<8x4xf32>
    %39 = math.exp %38 : vector<8x4xf32>
    %cst_26 = arith.constant 1.000000e+00 : f32
    %40 = vector.broadcast %cst_26 : f32 to vector<8x4xf32>
    %41 = arith.mulf %39, %40 : vector<8x4xf32>
    %c0_27 = arith.constant 0 : index
    %c0_28 = arith.constant 0 : index
    %42 = vector.load %arg2[%c0_27, %c0_28] : memref<8x4xf32, #tpu.memory_space<vmem>>, vector<8x4xf32>
    %43 = arith.mulf %41, %42 : vector<8x4xf32>
    %44 = arith.addf %31, %43 : vector<8x4xf32>
    %45 = math.tanh %44 : vector<8x4xf32>
    %cst_29 = arith.constant 1.000000e+00 : f32
    %46 = vector.broadcast %cst_29 : f32 to vector<8x4xf32>
    %47 = arith.mulf %46, %45 : vector<8x4xf32>
    %c0_30 = arith.constant 0 : index
    %c0_31 = arith.constant 0 : index
    %48 = vector.load %arg11[%c0_30, %c0_31] : memref<8x5xf32, #tpu.memory_space<vmem>>, vector<8x4xf32>
    tpu.vector_store %arg11[%c0_30, %c0_31], %47 {strides = array<i32>} : memref<8x5xf32, #tpu.memory_space<vmem>>, vector<8x4xf32>,
    %c0_32 = arith.constant 0 : index
    %c0_33 = arith.constant 0 : index
    %49 = vector.load %arg2[%c0_32, %c0_33] : memref<8x4xf32, #tpu.memory_space<vmem>>, vector<8x4xf32>
    %cst_34 = arith.constant 5.000000e-01 : f32
    %50 = vector.broadcast %cst_34 : f32 to vector<8x4xf32>
    %51 = arith.mulf %50, %49 : vector<8x4xf32>
    %52 = arith.mulf %51, %49 : vector<8x4xf32>
    %cst_35 = arith.constant 0.000000e+00 : f32
    %53 = vector.broadcast %cst_35 : f32 to vector<8x4xf32>
    %54 = arith.subf %53, %52 : vector<8x4xf32>
    %55 = arith.subf %54, %38 : vector<8x4xf32>
    %cst_36 = arith.constant 0.918938517 : f32
    %56 = vector.broadcast %cst_36 : f32 to vector<8x4xf32>
    %57 = arith.subf %55, %56 : vector<8x4xf32>
    %cst_37 = arith.constant dense<0.000000e+00> : vector<8xf32>
    %58 = vector.multi_reduction <add>, %57, %cst_37 [1] : vector<8x4xf32> to vector<8xf32>
    %59 = vector.shape_cast %58 : vector<8xf32> to vector<8x1xf32>
    %cst_38 = arith.constant 0.693147182 : f32
    %60 = vector.broadcast %cst_38 : f32 to vector<8x4xf32>
    %61 = arith.subf %60, %44 : vector<8x4xf32>
    %cst_39 = arith.constant -2.000000e+00 : f32
    %62 = vector.broadcast %cst_39 : f32 to vector<8x4xf32>
    %63 = arith.mulf %62, %44 : vector<8x4xf32>
    %cst_40 = arith.constant 0.000000e+00 : f32
    %64 = vector.broadcast %cst_40 : f32 to vector<8x4xf32>
    %65 = arith.maximumf %63, %64 : vector<8x4xf32>
    %66 = math.absf %63 : vector<8x4xf32>
    %cst_41 = arith.constant 0.000000e+00 : f32
    %67 = vector.broadcast %cst_41 : f32 to vector<8x4xf32>
    %68 = arith.subf %67, %66 : vector<8x4xf32>
    %69 = math.exp %68 : vector<8x4xf32>
    %70 = math.log1p %69 : vector<8x4xf32>
    %71 = arith.addf %65, %70 : vector<8x4xf32>
    %72 = arith.subf %61, %71 : vector<8x4xf32>
    %cst_42 = arith.constant 2.000000e+00 : f32
    %73 = vector.broadcast %cst_42 : f32 to vector<8x4xf32>
    %74 = arith.mulf %73, %72 : vector<8x4xf32>
    %cst_43 = arith.constant dense<0.000000e+00> : vector<8xf32>
    %75 = vector.multi_reduction <add>, %74, %cst_43 [1] : vector<8x4xf32> to vector<8xf32>
    %76 = vector.shape_cast %75 : vector<8xf32> to vector<8x1xf32>
    %77 = arith.subf %59, %76 : vector<8x1xf32>
    %c0_44 = arith.constant 0 : index
    %c4 = arith.constant 4 : index
    %78 = vector.load %arg11[%c0_44, %c4] : memref<8x5xf32, #tpu.memory_space<vmem>>, vector<8x1xf32>
    tpu.vector_store %arg11[%c0_44, %c4], %77 {strides = array<i32>} : memref<8x5xf32, #tpu.memory_space<vmem>>, vector<8x1xf32>,
    return
  }
  func.func @transform_0(%arg0: i32) -> (i32, i32) {
    %c0_i32 = arith.constant 0 : i32
    %c0_i32_0 = arith.constant 0 : i32
    return %arg0, %c0_i32 : i32, i32
  }
  func.func @transform_1(%arg0: i32) -> (i32, i32) {
    %c0_i32 = arith.constant 0 : i32
    %c0_i32_0 = arith.constant 0 : i32
    return %arg0, %c0_i32 : i32, i32
  }
  func.func @transform_2(%arg0: i32) -> (i32, i32) {
    %c0_i32 = arith.constant 0 : i32
    %c0_i32_0 = arith.constant 0 : i32
    %c0_i32_1 = arith.constant 0 : i32
    return %c0_i32, %c0_i32_0 : i32, i32
  }
  func.func @transform_3(%arg0: i32) -> (i32, i32) {
    %c0_i32 = arith.constant 0 : i32
    %c0_i32_0 = arith.constant 0 : i32
    %c0_i32_1 = arith.constant 0 : i32
    return %c0_i32, %c0_i32_0 : i32, i32
  }
  func.func @transform_4(%arg0: i32) -> (i32, i32) {
    %c0_i32 = arith.constant 0 : i32
    %c0_i32_0 = arith.constant 0 : i32
    %c0_i32_1 = arith.constant 0 : i32
    return %c0_i32, %c0_i32_0 : i32, i32
  }
  func.func @transform_5(%arg0: i32) -> (i32, i32) {
    %c0_i32 = arith.constant 0 : i32
    %c0_i32_0 = arith.constant 0 : i32
    %c0_i32_1 = arith.constant 0 : i32
    return %c0_i32, %c0_i32_0 : i32, i32
  }
  func.func @transform_6(%arg0: i32) -> (i32, i32) {
    %c0_i32 = arith.constant 0 : i32
    %c0_i32_0 = arith.constant 0 : i32
    %c0_i32_1 = arith.constant 0 : i32
    return %c0_i32, %c0_i32_0 : i32, i32
  }
  func.func @transform_7(%arg0: i32) -> (i32, i32) {
    %c0_i32 = arith.constant 0 : i32
    %c0_i32_0 = arith.constant 0 : i32
    %c0_i32_1 = arith.constant 0 : i32
    return %c0_i32, %c0_i32_0 : i32, i32
  }
  func.func @transform_8(%arg0: i32) -> (i32, i32) {
    %c0_i32 = arith.constant 0 : i32
    %c0_i32_0 = arith.constant 0 : i32
    %c0_i32_1 = arith.constant 0 : i32
    return %c0_i32, %c0_i32_0 : i32, i32
  }
  func.func @transform_9(%arg0: i32) -> (i32, i32) {
    %c0_i32 = arith.constant 0 : i32
    %c0_i32_0 = arith.constant 0 : i32
    %c0_i32_1 = arith.constant 0 : i32
    return %c0_i32, %c0_i32_0 : i32, i32
  }
  func.func @transform_10(%arg0: i32) -> (i32, i32) {
    %c0_i32 = arith.constant 0 : i32
    %c0_i32_0 = arith.constant 0 : i32
    return %arg0, %c0_i32 : i32, i32
  }
}

</mosaic_0001>

<bundles_post_ra>
// kernel: tpu_custom_call.1
= control target key start
LH: loop header
LB: loop body
LE: loop exit
PB: predicated region body
PF: predicated region fallthrough
CT: control target
= control target key end

     0   :  { %15 = vsyncpa [#allocation3], 0  ;;  %s1391_s0 = inlined_call_operand.vmem [shape: f32[8,13], index: 0, kind: input, shape index: {}]   ;;  %s1392_s1 = inlined_call_operand.vmem [shape: f32[8,4], index: 1, kind: input, shape index: {}]   ;;  %s1393_s2 = inlined_call_operand.vmem [shape: bf16[13,256], index: 2, kind: input, shape index: {}]   ;;  %s1394_s3 = inlined_call_operand.vmem [shape: f32[1,256], index: 3, kind: input, shape index: {}]   ;;  %s1395_s4 = inlined_call_operand.hbm [shape: bf16[256,256], index: 4, kind: input, shape index: {}]   ;;  %s1396_s5 = inlined_call_operand.vmem [shape: f32[1,256], index: 5, kind: input, shape index: {}]   ;;  %s1397_s6 = inlined_call_operand.hbm [shape: bf16[256,256], index: 6, kind: input, shape index: {}]   ;;  %s1398_s7 = inlined_call_operand.vmem [shape: f32[1,256], index: 7, kind: input, shape index: {}]   ;;  %s1399_s8 = inlined_call_operand.vmem [shape: bf16[256,8], index: 8, kind: input, shape index: {}]   ;;  %s1400_s9 = inlined_call_operand.vmem [shape: f32[1,8], index: 9, kind: input, shape index: {}]   ;;  %s1401_s10 = inlined_call_operand.hbm [shape: f32[8,5], index: 10, kind: output, shape index: {}]  }
   0x1   :  { %16 = vsyncpa [#allocation6], 0 }
   0x2   :  { %17 = vsyncpa [#allocation4], 0  ;;  %s1206_s13 = smov [#allocation2]   ;;  %s1134_s17 = scalar_lea.hbm %s1395_s4, 4096 }
   0x3   :  { %s31_s14 = sshll.u32 %s1206_s13, 4  ;;  %p1135_p0 = scmp.ne.s32.totalorder %s1395_s4, %s1134_s17  ;;  %s32_s14 = int_to_ptr.vmem [resolvable:$true] %s31_s14 }
   0x4   :  { %p1138_p1 = scmp.lt.u32.totalorder %s1134_s17, %s1395_s4 }
   0x6   :  { %p1140_p2 = pnand %p1138_p1, %p1135_p0 }
   0x8   :  { %1143 = shalt.err (!%p1140_p2)
}
   0x9   :  { %s1144_s22 = scalar_lea.vmem %s32_s14, 4096  ;;  %p1149_p4 = scmp.lt.s32.totalorder %s32_s14, %s32_s14 }
   0xa   :  { %p1145_p3 = scmp.ne.s32.totalorder %s32_s14, %s1144_s22  ;;  %p1150_p5 = scmp.lt.s32.totalorder %s1144_s22, %s1144_s22 }
   0xc   :  { %p1151_p6 = por %p1150_p5, %p1149_p4 }
   0xe   :  { %p1152_p7 = pnand %p1151_p6, %p1145_p3 }
  0x10   :  { %1155 = shalt.err (!%p1152_p7)
}
  0x11   :  { %s1207_s23 = smov 128   ;;  %s1208_s24 = smov 8  }
  0x12   :  { %37 = dma.hbm_to_vmem [thread:$0]  %s1395_s4, 4096, %s32_s14, [#allocation3], %s1207_s23, %s1207_s23, %s1208_s24  }
  0x13   :  { %s1209_s27 = smov [#allocation5]   ;;  %s1156_s11 = scalar_lea.hbm %s1397_s6, 4096 }
  0x14   :  { %s45_s28 = sshll.u32 %s1209_s27, 4  ;;  %p1157_p8 = scmp.ne.s32.totalorder %s1397_s6, %s1156_s11  ;;  %s46_s28 = int_to_ptr.vmem [resolvable:$true] %s45_s28 }
  0x15   :  { %p1160_p9 = scmp.lt.u32.totalorder %s1156_s11, %s1397_s6 }
  0x17   :  { %p1162_p10 = pnand %p1160_p9, %p1157_p8 }
  0x19   :  { %1165 = shalt.err (!%p1162_p10)
}
  0x1a   :  { %s1166_s17 = scalar_lea.vmem %s46_s28, 4096  ;;  %p1171_p12 = scmp.lt.s32.totalorder %s46_s28, %s46_s28 }
  0x1b   :  { %p1167_p11 = scmp.ne.s32.totalorder %s46_s28, %s1166_s17  ;;  %p1172_p13 = scmp.lt.s32.totalorder %s1166_s17, %s1166_s17 }
  0x1d   :  { %p1173_p0 = por %p1172_p13, %p1171_p12 }
  0x1f   :  { %p1174_p1 = pnand %p1173_p0, %p1167_p11 }
  0x21   :  { %1177 = shalt.err (!%p1174_p1)
}
  0x22   :  { %51 = dma.hbm_to_vmem [thread:$0]  %s1397_s6, 4096, %s46_s28, [#allocation6], %s1207_s23, %s1207_s23, %s1208_s24  }
  0x23   :  { %1200 = dma.done.wait [#allocation3], 4096  }
  0x24   :  { %1201 = vsyncadd [#allocation3], 4294963200 }
  0x25   :  { %1202 = dma.done.wait [#allocation6], 4096  }
  0x26   :  { %1203 = vsyncadd [#allocation6], 4294963200  ;;  %vm93_vm0 = vcmask 1045504   ;;  %v1210_v0 = vmov 0   ;;  %vm94_vm1 = vcmask 1046528   ;;  %v1211_v1 = vmov 65535  }
  0x27   :  { %135 = vmatprep.mubr.bf16.mxu0 %v1210_v0  ;;  %v95_v2 = vsel %vm93_vm0, 4294967295, %v1211_v1  ;;  %v1011_v4 = vld [vmem:[%s1393_s2 + $0x4] ss:$8 sps:$4 sm:$0x7f]   ;;  %v1016_v9 = vld [vmem:[#allocation2] ss:$8 sps:$4 sm:$0xff]  }
  0x28   :  { %v96_v3 = vsel %vm94_vm1, %v95_v2, 0  ;;  %v1013_v5 = vld [vmem:[%s1393_s2] ss:$8 sps:$4 sm:$0x7f]   ;;  %v1014_v8 = vld [vmem:[#allocation2 + $0x4] ss:$8 sps:$4 sm:$0xff]  }
  0x29   :  { %v65_v6 = vld [vmem:[%s1391_s0] sm:$0xff]  ;;  %v101_v7 = vand.u32 %v1011_v4, %v96_v3  ;;  %v98_v10 = vand.u32 %v1013_v5, %v96_v3  ;;  %v1017_v11 = vld [vmem:[#allocation2 + $0x14] ss:$8 sps:$4 sm:$0xff]   ;;  %352 = vmatprep.subr.bf16.mxu1 %v1014_v8  ;;  %vm89_vm2 = vcmask 105472   ;;  %v1019_v13 = vld [vmem:[#allocation2 + $0x10] ss:$8 sps:$4 sm:$0xff]  }
  0x2a   :  { %v66_v12 = vpack.c.bf16 %v65_v6, %v65_v6  ;;  %353 = vmatpush1.bf16.msra.mxu1 %v1016_v9  ;;  %v1020_v14 = vld [vmem:[#allocation2 + $0x24] ss:$8 sps:$4 sm:$0xff]   ;;  %v1022_v15 = vld [vmem:[#allocation2 + $0x20] ss:$8 sps:$4 sm:$0xff]   ;;  %v1023_v16 = vld [vmem:[#allocation2 + $0x34] ss:$8 sps:$4 sm:$0xff]   ;;  %v71_v6 = vlaneseq }
  0x2b   :  { %103 = vmatprep.subr.bf16.mxu0 %v101_v7  ;;  %354 = vmatprep.subr.bf16.mxu1 %v1017_v11  ;;  %v1025_v17 = vld [vmem:[#allocation2 + $0x30] ss:$8 sps:$4 sm:$0xff]   ;;  %v1026_v18 = vld [vmem:[#allocation2 + $0x44] ss:$8 sps:$4 sm:$0xff]   ;;  %v1028_v19 = vld [vmem:[#allocation2 + $0x40] ss:$8 sps:$4 sm:$0xff]  }
  0x2c   :  { %104 = vmatpush1.bf16.msra.mxu0 %v98_v10  ;;  %v1029_v20 = vld [vmem:[#allocation2 + $0x54] ss:$8 sps:$4 sm:$0xff]   ;;  %v1031_v21 = vld [vmem:[#allocation2 + $0x50] ss:$8 sps:$4 sm:$0xff]   ;;  %v1032_v22 = vld [vmem:[#allocation2 + $0x64] ss:$8 sps:$4 sm:$0xff]  }
  0x2d   :  { %v1034_v23 = vld [vmem:[#allocation2 + $0x60] ss:$8 sps:$4 sm:$0xff]   ;;  %v1035_v24 = vld [vmem:[#allocation2 + $0x74] ss:$8 sps:$4 sm:$0xff]   ;;  %v1037_v25 = vld [vmem:[#allocation2 + $0x70] ss:$8 sps:$4 sm:$0xff]  }
  0x2e   :  { %355 = vmatpush1.bf16.msra.mxu1 %v1019_v13  ;;  %v1038_v26 = vld [vmem:[#allocation2 + $0x84] ss:$8 sps:$4 sm:$0xff]   ;;  %v1040_v27 = vld [vmem:[#allocation2 + $0x80] ss:$8 sps:$4 sm:$0xff]   ;;  %v1041_v28 = vld [vmem:[#allocation2 + $0x94] ss:$8 sps:$4 sm:$0xff]  }
  0x2f   :  { %896 = vmatmul.mubr.msk.bf16.vlgmr.msra.gmra.mrb[0].mxu0 %vm89_vm2, %v66_v12  ;;  %356 = vmatprep.subr.bf16.mxu1 %v1020_v14  ;;  %v1043_v29 = vld [vmem:[#allocation2 + $0x90] ss:$8 sps:$4 sm:$0xff]   ;;  %v1044_v30 = vld [vmem:[#allocation2 + $0xa4] ss:$8 sps:$4 sm:$0xff]   ;;  %v1046_v31 = vld [vmem:[#allocation2 + $0xa0] ss:$8 sps:$4 sm:$0xff]  }
  0x30   :  { %v1047_v32 = vld [vmem:[#allocation2 + $0xb4] ss:$8 sps:$4 sm:$0xff]   ;;  %v1049_v33 = vld [vmem:[#allocation2 + $0xb0] ss:$8 sps:$4 sm:$0xff]   ;;  %v1050_v34 = vld [vmem:[#allocation2 + $0xc4] ss:$8 sps:$4 sm:$0xff]  }
  0x31   :  { %v1052_v35 = vld [vmem:[#allocation2 + $0xc0] ss:$8 sps:$4 sm:$0xff]   ;;  %v1053_v36 = vld [vmem:[#allocation2 + $0xd4] ss:$8 sps:$4 sm:$0xff]   ;;  %v1055_v37 = vld [vmem:[#allocation2 + $0xd0] ss:$8 sps:$4 sm:$0xff]  }
  0x32   :  { %357 = vmatpush1.bf16.msra.mxu1 %v1022_v15  ;;  %v1056_v38 = vld [vmem:[#allocation2 + $0xe4] ss:$8 sps:$4 sm:$0xff]   ;;  %v1058_v39 = vld [vmem:[#allocation2 + $0xe0] ss:$8 sps:$4 sm:$0xff]   ;;  %v1059_v40 = vld [vmem:[#allocation2 + $0xf4] ss:$8 sps:$4 sm:$0xff]  }
  0x33   :  { %358 = vmatprep.subr.bf16.mxu1 %v1023_v16  ;;  %v1061_v41 = vld [vmem:[#allocation2 + $0xf0] ss:$8 sps:$4 sm:$0xff]   ;;  %v1062_v42 = vld [vmem:[#allocation5] ss:$8 sps:$4 sm:$0xff]   ;;  %v1064_v43 = vld [vmem:[#allocation5 + $0x4] ss:$8 sps:$4 sm:$0xff]  }
  0x34   :  { %v1067_v44 = vld [vmem:[#allocation5 + $0x14] ss:$8 sps:$4 sm:$0xff]   ;;  %601 = vmatprep.subr.bf16.mxu0 %v1064_v43  ;;  %v1065_v45 = vld [vmem:[#allocation5 + $0x10] ss:$8 sps:$4 sm:$0xff]   ;;  %v1070_v46 = vld [vmem:[#allocation5 + $0x24] ss:$8 sps:$4 sm:$0xff]  }
  0x35   :  { %602 = vmatpush1.bf16.msra.mxu0 %v1062_v42  ;;  %v1068_v47 = vld [vmem:[#allocation5 + $0x20] ss:$8 sps:$4 sm:$0xff]   ;;  %v1073_v48 = vld [vmem:[#allocation5 + $0x34] ss:$8 sps:$4 sm:$0xff]   ;;  %v1071_v49 = vld [vmem:[#allocation5 + $0x30] ss:$8 sps:$4 sm:$0xff]  }
  0x36   :  { %359 = vmatpush1.bf16.msra.mxu1 %v1025_v17  ;;  %603 = vmatprep.subr.bf16.mxu0 %v1067_v44  ;;  %v1076_v50 = vld [vmem:[#allocation5 + $0x44] ss:$8 sps:$4 sm:$0xff]   ;;  %v1074_v51 = vld [vmem:[#allocation5 + $0x40] ss:$8 sps:$4 sm:$0xff]   ;;  %v1079_v52 = vld [vmem:[#allocation5 + $0x54] ss:$8 sps:$4 sm:$0xff]  }
  0x37   :  { %360 = vmatprep.subr.bf16.mxu1 %v1026_v18  ;;  %v1077_v53 = vld [vmem:[#allocation5 + $0x50] ss:$8 sps:$4 sm:$0xff]   ;;  %v1082_v54 = vld [vmem:[#allocation5 + $0x64] ss:$8 sps:$4 sm:$0xff]   ;;  %v1080_v55 = vld [vmem:[#allocation5 + $0x60] ss:$8 sps:$4 sm:$0xff]  }
  0x38   :  { %v1085_v56 = vld [vmem:[#allocation5 + $0x74] ss:$8 sps:$4 sm:$0xff]   ;;  %v1083_v57 = vld [vmem:[#allocation5 + $0x70] ss:$8 sps:$4 sm:$0xff]   ;;  %v1088_v58 = vld [vmem:[#allocation5 + $0x84] ss:$8 sps:$4 sm:$0xff]  }
  0x39   :  { %604 = vmatpush1.bf16.msra.mxu0 %v1065_v45  ;;  %v1086_v59 = vld [vmem:[#allocation5 + $0x80] ss:$8 sps:$4 sm:$0xff]   ;;  %v1091_v60 = vld [vmem:[#allocation5 + $0x94] ss:$8 sps:$4 sm:$0xff]   ;;  %v1089_v61 = vld [vmem:[#allocation5 + $0x90] ss:$8 sps:$4 sm:$0xff]  }
  0x3a   :  { %361 = vmatpush1.bf16.msra.mxu1 %v1028_v19  ;;  %605 = vmatprep.subr.bf16.mxu0 %v1070_v46  ;;  %v1094_v62 = vld [vmem:[#allocation5 + $0xa4] ss:$8 sps:$4 sm:$0xff]   ;;  %v1092_v63 = vld [vmem:[#allocation5 + $0xa0] ss:$8 sps:$4 sm:$0xff]   ;;  %v1097_v0 = vld [vmem:[#allocation5 + $0xb4] ss:$8 sps:$4 sm:$0xff]  }
  0x3b   :  { %362 = vmatprep.subr.bf16.mxu1 %v1029_v20  ;;  %v1095_v1 = vld [vmem:[#allocation5 + $0xb0] ss:$8 sps:$4 sm:$0xff]   ;;  %v1100_v2 = vld [vmem:[#allocation5 + $0xc4] ss:$8 sps:$4 sm:$0xff]   ;;  %v1098_v3 = vld [vmem:[#allocation5 + $0xc0] ss:$8 sps:$4 sm:$0xff]  }
  0x3c   :  { %v1103_v4 = vld [vmem:[#allocation5 + $0xd4] ss:$8 sps:$4 sm:$0xff]   ;;  %v1101_v5 = vld [vmem:[#allocation5 + $0xd0] ss:$8 sps:$4 sm:$0xff]   ;;  %v72_v7 = vshrl.u32 %v71_v6, 7  ;;  %s1212_s12 = smov 4  }
  0x3d   :  { %606 = vmatpush1.bf16.msra.mxu0 %v1068_v47  ;;  %v69_v9 = vld [vmem:[%s1394_s3] sm:$0x3]  ;;  %vm838_vm3 = vcmask 31744   ;;  %vm876_vm5 = vcmask 39968  }
  0x3e   :  { %363 = vmatpush1.bf16.msra.mxu1 %v1031_v21  ;;  %607 = vmatprep.subr.bf16.mxu0 %v1073_v48  ;;  %v1303_v8 = vsub.s32 0, %v72_v7  ;;  %v1308_v10 = vsub.s32 1, %v72_v7  ;;  %v961_v7 = vld [vmem:[%s1400_s9] ss:$0 sm:$0xff]  ;;  %s1214_s9 = smov [#allocation7]  }
  0x3f   :  { %364 = vmatprep.subr.bf16.mxu1 %v1032_v22  ;;  %s884_s16 = sshll.u32 %s1214_s9, 4  ;;  %s885_s16 = int_to_ptr.vmem [resolvable:$true] %s884_s16 }
  0x40   :  { %v74_v11 = vrot.slane %v69_v9, %v1303_v8  ;;  %v78_v12 = vrot.slane %v69_v9, %v1308_v10  ;;  %s1178_s17 = scalar_lea.vmem %s885_s16, 128  ;;  %p1183_p3 = scmp.lt.s32.totalorder %s885_s16, %s885_s16 }
  0x41   :  { %608 = vmatpush1.bf16.msra.mxu0 %v1071_v49  ;;  %p1179_p2 = scmp.ne.s32.totalorder %s885_s16, %s1178_s17  ;;  %p1184_p4 = scmp.lt.s32.totalorder %s1178_s17, %s1178_s17 }
  0x42   :  { %365 = vmatpush1.bf16.msra.mxu1 %v1034_v23  ;;  %609 = vmatprep.subr.bf16.mxu0 %v1076_v50  ;;  %v1106_v23 = vld [vmem:[#allocation5 + $0xe4] ss:$8 sps:$4 sm:$0xff]  }
  0x43   :  { %366 = vmatprep.subr.bf16.mxu1 %v1035_v24  ;;  %v1104_v24 = vld [vmem:[#allocation5 + $0xe0] ss:$8 sps:$4 sm:$0xff]   ;;  %p1185_p5 = por %p1184_p4, %p1183_p3 }
  0x45   :  { %610 = vmatpush1.bf16.msra.mxu0 %v1074_v51  ;;  %p1186_p6 = pnand %p1185_p5, %p1179_p2 }
  0x46   :  { %367 = vmatpush1.bf16.msra.mxu1 %v1037_v25  ;;  %611 = vmatprep.subr.bf16.mxu0 %v1079_v52  ;;  %v1109_v25 = vld [vmem:[#allocation5 + $0xf4] ss:$8 sps:$4 sm:$0xff]  }
  0x47   :  { %368 = vmatprep.subr.bf16.mxu1 %v1038_v26  ;;  %v1107_v26 = vld [vmem:[#allocation5 + $0xf0] ss:$8 sps:$4 sm:$0xff]  }
  0x48   :  { %v1122_v52 = vld [vmem:[%s1399_s8 + $0x70] sm:$0xff]  }
  0x49   :  { %612 = vmatpush1.bf16.msra.mxu0 %v1077_v53  ;;  %v1123_v53 = vld [vmem:[%s1399_s8 + $0x30] sm:$0xff]  }
  0x4a   :  { %369 = vmatpush1.bf16.msra.mxu1 %v1040_v27  ;;  %613 = vmatprep.subr.bf16.mxu0 %v1082_v54  ;;  %v1110_v27 = vld [vmem:[%s1399_s8 + $0x40] sm:$0xff]   ;;  %v1124_v54 = vld [vmem:[%s1399_s8 + $0x78] sm:$0xff]  }
  0x4b   :  { %370 = vmatprep.subr.bf16.mxu1 %v1041_v28  ;;  %v1111_v28 = vld [vmem:[%s1399_s8] sm:$0xff]  }
  0x4d   :  { %614 = vmatpush1.bf16.msra.mxu0 %v1080_v55  ;;  %v1125_v55 = vld [vmem:[%s1399_s8 + $0x38] sm:$0xff]  }
  0x4e   :  { %371 = vmatpush1.bf16.msra.mxu1 %v1043_v29  ;;  %615 = vmatprep.subr.bf16.mxu0 %v1085_v56  ;;  %v1112_v29 = vld [vmem:[%s1399_s8 + $0x48] sm:$0xff]   ;;  %v826_v56 = vld [vmem:[%s1392_s1] sm:$0xff] }
  0x4f   :  { %372 = vmatprep.subr.bf16.mxu1 %v1044_v30  ;;  %v1113_v30 = vld [vmem:[%s1399_s8 + $0x8] sm:$0xff]   ;;  %828 = vrot.lane.b32.xlu0 %v826_v56, %s1212_s12 }
  0x51   :  { %616 = vmatpush1.bf16.msra.mxu0 %v1083_v57  ;;  %v429_v57 = vld [vmem:[%s1398_s7] sm:$0x3]  ;;  %s1213_s7 = smov 124  }
  0x52   :  { %373 = vmatpush1.bf16.msra.mxu1 %v1046_v31  ;;  %617 = vmatprep.subr.bf16.mxu0 %v1088_v58  ;;  %v1114_v31 = vld [vmem:[%s1399_s8 + $0x50] sm:$0xff]   ;;  %v434_v58 = vrot.slane %v429_v57, %v1303_v8 }
  0x53   :  { %374 = vmatprep.subr.bf16.mxu1 %v1047_v32  ;;  %v1115_v32 = vld [vmem:[%s1399_s8 + $0x10] sm:$0xff]  }
  0x55   :  { %618 = vmatpush1.bf16.msra.mxu0 %v1086_v59  ;;  %v438_v59 = vrot.slane %v429_v57, %v1308_v10 }
  0x56   :  { %375 = vmatpush1.bf16.msra.mxu1 %v1049_v33  ;;  %619 = vmatprep.subr.bf16.mxu0 %v1091_v60  ;;  %v1116_v33 = vld [vmem:[%s1399_s8 + $0x58] sm:$0xff]  }
  0x57   :  { %376 = vmatprep.subr.bf16.mxu1 %v1050_v34  ;;  %v1117_v34 = vld [vmem:[%s1399_s8 + $0x18] sm:$0xff]  }
  0x59   :  { %620 = vmatpush1.bf16.msra.mxu0 %v1089_v61 }
  0x5a   :  { %377 = vmatpush1.bf16.msra.mxu1 %v1052_v35  ;;  %621 = vmatprep.subr.bf16.mxu0 %v1094_v62  ;;  %v1118_v35 = vld [vmem:[%s1399_s8 + $0x60] sm:$0xff]  }
  0x5b   :  { %378 = vmatprep.subr.bf16.mxu1 %v1053_v36  ;;  %v1119_v36 = vld [vmem:[%s1399_s8 + $0x20] sm:$0xff]  }
  0x5d   :  { %622 = vmatpush1.bf16.msra.mxu0 %v1092_v63 }
  0x5e   :  { %379 = vmatpush1.bf16.msra.mxu1 %v1055_v37  ;;  %623 = vmatprep.subr.bf16.mxu0 %v1097_v0  ;;  %v1120_v37 = vld [vmem:[%s1399_s8 + $0x68] sm:$0xff]  }
  0x5f   :  { %380 = vmatprep.subr.bf16.mxu1 %v1056_v38  ;;  %v1121_v38 = vld [vmem:[%s1399_s8 + $0x28] sm:$0xff]  }
  0x61   :  { %624 = vmatpush1.bf16.msra.mxu0 %v1095_v1 }
  0x62   :  { %381 = vmatpush1.bf16.msra.mxu1 %v1058_v39  ;;  %625 = vmatprep.subr.bf16.mxu0 %v1100_v2  ;;  %v180_v39 = vld [vmem:[%s1396_s5] sm:$0x3] }
  0x63   :  { %382 = vmatprep.subr.bf16.mxu1 %v1059_v40  ;;  %v185_v40 = vrot.slane %v180_v39, %v1303_v8 }
  0x65   :  { %626 = vmatpush1.bf16.msra.mxu0 %v1098_v3 }
  0x66   :  { %383 = vmatpush1.bf16.msra.mxu1 %v1061_v41  ;;  %627 = vmatprep.subr.bf16.mxu0 %v1103_v4  ;;  %v189_v41 = vrot.slane %v180_v39, %v1308_v10 }
  0x67   :  { %980 = vmatprep.subr.bf16.mxu1 %v1110_v27 }
  0x69   :  { %628 = vmatpush1.bf16.msra.mxu0 %v1101_v5 }
  0x6a   :  { %629 = vmatprep.subr.bf16.mxu0 %v1106_v23 }
  0x6d   :  { %630 = vmatpush1.bf16.msra.mxu0 %v1104_v24 }
  0x6e   :  { %631 = vmatprep.subr.bf16.mxu0 %v1109_v25 }
  0x71   :  { %632 = vmatpush1.bf16.msra.mxu0 %v1107_v26 }
 0x102   :  { %v137_v13 = vpop.f32.mrb[0].mxu0 }
 0x103   :  { %v138_v14 = vadd.f32 %v137_v13, %v74_v11  ;;  %v139_v15 = vpop.f32.mrb[1].mxu0 }
 0x104   :  { %v140_v16 = vadd.f32 %v139_v15, %v78_v12  ;;  %v141_v17 = vpop.f32.mrb[2].mxu0 }
 0x105   :  { %v144_v18 = vmax.f32 %v138_v14, 0.0  ;;  %v142_v19 = vpop.f32.mrb[3].mxu0  ;;  %v829_v17 = vpop.permute.xlu0 %828 }
 0x106   :  { %v145_v20 = vmax.f32 %v140_v16, 0.0 }
 0x107   :  { %v146_v22 = vpack.c.bf16 %v144_v18, %v144_v18 }
 0x108   :  { %v147_v21 = vpack.c.bf16 %v145_v20, %v145_v20  ;;  %v841_v20 = vmul.f32 0.5, %v826_v56 }
 0x10a   :  { %384 = vmatprep.mubr.bf16.mxu1 %v147_v21  ;;  %v842_v21 = vmul.f32 %v841_v20, %v826_v56 }
 0x10b   :  { %385 = vmatmul.mubr.bf16.vlgmr.msra.gmra.mrb[0].mxu1 %v146_v22 }
 0x10c   :  { %981 = vmatpush3.bf16.msra.mxu1 %v1111_v28  ;;  %v843_v22 = vsub.f32 0.0, %v842_v21 }
 0x10d   :  { %982 = vmatprep.subr.bf16.mxu1 %v1112_v29 }
 0x110   :  { %983 = vmatpush3.bf16.msra.mxu1 %v1113_v30 }
 0x111   :  { %984 = vmatprep.subr.bf16.mxu1 %v1114_v31 }
 0x114   :  { %985 = vmatpush3.bf16.msra.mxu1 %v1115_v32 }
 0x115   :  { %986 = vmatprep.subr.bf16.mxu1 %v1116_v33 }
 0x118   :  { %987 = vmatpush3.bf16.msra.mxu1 %v1117_v34 }
 0x119   :  { %988 = vmatprep.subr.bf16.mxu1 %v1118_v35 }
 0x11c   :  { %989 = vmatpush3.bf16.msra.mxu1 %v1119_v36 }
 0x11d   :  { %990 = vmatprep.subr.bf16.mxu1 %v1120_v37 }
 0x120   :  { %991 = vmatpush3.bf16.msra.mxu1 %v1121_v38 }
 0x121   :  { %992 = vmatprep.subr.bf16.mxu1 %v1122_v52 }
 0x124   :  { %993 = vmatpush3.bf16.msra.mxu1 %v1123_v53 }
 0x125   :  { %994 = vmatprep.subr.bf16.mxu1 %v1124_v54 }
 0x128   :  { %995 = vmatpush3.bf16.msra.mxu1 %v1125_v55 }
 0x1de   :  { %v386_v42 = vpop.f32.mrb[0].mxu1 }
 0x1df   :  { %v387_v43 = vadd.f32 %v386_v42, %v185_v40  ;;  %v388_v44 = vpop.f32.mrb[1].mxu1 }
 0x1e0   :  { %v389_v45 = vadd.f32 %v388_v44, %v189_v41  ;;  %v390_v46 = vpop.f32.mrb[2].mxu1 }
 0x1e1   :  { %v393_v47 = vmax.f32 %v387_v43, 0.0  ;;  %v391_v48 = vpop.f32.mrb[3].mxu1 }
 0x1e2   :  { %v394_v49 = vmax.f32 %v389_v45, 0.0 }
 0x1e3   :  { %v395_v51 = vpack.c.bf16 %v393_v47, %v393_v47 }
 0x1e4   :  { %v396_v50 = vpack.c.bf16 %v394_v49, %v394_v49 }
 0x1e6   :  { %633 = vmatprep.mubr.bf16.mxu0 %v396_v50 }
 0x1e7   :  { %634 = vmatmul.mubr.bf16.vlgmr.msra.gmra.mrb[4].mxu0 %v395_v51 }
 0x2ba   :  { %v635_v60 = vpop.f32.mrb[4].mxu0 }
 0x2bb   :  { %v636_v61 = vadd.f32 %v635_v60, %v434_v58  ;;  %v637_v62 = vpop.f32.mrb[5].mxu0 }
 0x2bc   :  { %v638_v63 = vadd.f32 %v637_v62, %v438_v59  ;;  %v639_v0 = vpop.f32.mrb[6].mxu0 }
 0x2bd   :  { %v642_v1 = vmax.f32 %v636_v61, 0.0  ;;  %v640_v2 = vpop.f32.mrb[7].mxu0 }
 0x2be   :  { %v643_v3 = vmax.f32 %v638_v63, 0.0 }
 0x2bf   :  { %v644_v5 = vpack.c.bf16 %v642_v1, %v642_v1 }
 0x2c0   :  { %v645_v4 = vpack.c.bf16 %v643_v3, %v643_v3 }
 0x2c2   :  { %813 = vmatprep.mubr.bf16.mxu1 %v645_v4 }
 0x2c3   :  { %814 = vmatmul.mubr.bf16.vlgmr.msra.gmra.mrb[4].mxu1 %v644_v5 }
 0x396   :  { %v996_v6 = vpop.f32.mrb[4].mxu1 }
 0x397   :  { %v997_v8 = vpop.f32.mrb[5].mxu1 }
 0x398   :  { %v998_v9 = vadd.f32 %v997_v8, %v996_v6  ;;  %v999_v10 = vpop.f32.mrb[6].mxu1 }
 0x399   :  { %v1000_v11 = vpop.f32.mrb[7].mxu1 }
 0x39a   :  { %v816_v12 = vadd.f32 %v998_v9, %v961_v7 }
 0x39c   :  { %v978_v13 = vadd.f32 -1.0, %v816_v12 }
 0x39e   :  { %v822_v14 = vmax.f32 %v978_v13, -20.0 }
 0x3a0   :  { %v823_v15 = vmin.f32 %v822_v14, 2.0 }
 0x3a2   :  { %845 = vrot.lane.b32.xlu1 %v823_v15, %s1213_s7  ;;  %v824_v16 = vmul.f32 1.442695, %v823_v15 }
 0x3a4   :  { %1126 = vpow2.f32 %v824_v16 }
 0x3ae   :  { %v1127_v18 = vpop.eup %1126 }
 0x3af   :  { %v831_v19 = vmul.f32 %v1127_v18, %v829_v17 }
 0x3b1   :  { %833 = vrot.lane.b32.xlu0 %v831_v19, %s1213_s7 }
 0x414   :  { %v846_v23 = vpop.permute.xlu1 %845 }
 0x415   :  { %v848_v24 = vsub.f32 %v843_v22, %v846_v23 }
 0x417   :  { %v979_v25 = vadd.f32 -0.9189385, %v848_v24 }
 0x419   :  { %v850_v26 = vsel %vm838_vm3, %v979_v25, 0.0 }
 0x41a   :  { %851 = vadd.xlane.f32.xlu1 %v850_v26 }
 0x423   :  { %v834_v27 = vpop.permute.xlu0 %833 }
 0x424   :  { %v836_v28 = vadd.f32 %v834_v27, %v816_v12 }
 0x426   :  { %1128 = vtanh.f32 %v836_v28  ;;  %v854_v29 = vmul.f32 -2.0, %v836_v28  ;;  %v853_v44 = vsub.f32 0.6931472, %v836_v28 }
 0x428   :  { %v856_v30 = vand.u32 2147483647, %v854_v29  ;;  %v855_v42 = vmax.f32 %v854_v29, 0.0 }
 0x42a   :  { %v857_v31 = vsub.f32 0.0, %v856_v30 }
 0x42c   :  { %v858_v32 = vmul.f32 1.442695, %v857_v31 }
 0x42e   :  { %1130 = vpow2.f32 %v858_v32 }
 0x430   :  { %v1129_v33 = vpop.eup %1128 }
 0x431   :  { %839 = vst.msk [vmem:[#allocation7] sm:$0xff] %vm838_vm3, %v1129_v33 }
 0x438   :  { %v1131_v34 = vpop.eup %1130 }
 0x439   :  { %v860_v35 = vadd.f32 1.0, %v1131_v34  ;;  %v863_v36 = vmul.f32 -0.5, %v1131_v34  ;;  %v866_v38 = vand.u32 2147483647, %v1131_v34 }
 0x43b   :  { %1132 = vlog2.f32 %v860_v35  ;;  %v864_v37 = vadd.f32 1.0, %v863_v36  ;;  %vm867_vm4 = vcmp.lt.f32.partialorder %v866_v38, 0.0004427343 }
 0x43d   :  { %v865_v41 = vmul.f32 %v1131_v34, %v864_v37 }
 0x445   :  { %v1133_v39 = vpop.eup %1132 }
 0x446   :  { %v862_v40 = vmul.f32 0.6931472, %v1133_v39 }
 0x448   :  { %v868_v43 = vsel %vm867_vm4, %v865_v41, %v862_v40 }
 0x449   :  { %v869_v45 = vadd.f32 %v868_v43, %v855_v42 }
 0x44b   :  { %v870_v46 = vsub.f32 %v853_v44, %v869_v45 }
 0x44d   :  { %v871_v47 = vmul.f32 2.0, %v870_v46 }
 0x44f   :  { %v872_v48 = vsel %vm838_vm3, %v871_v47, 0.0 }
 0x450   :  { %873 = vadd.xlane.f32.xlu0 %v872_v48 }
 0x4a7   :  { %v852_v49 = vpop.xlane.xlu1 %851 }
 0x4dd   :  { %v874_v50 = vpop.xlane.xlu0 %873 }
 0x4de   :  { %v875_v51 = vsub.f32 %v852_v49, %v874_v50 }
 0x4e0   :  { %877 = vst.msk [vmem:[#allocation7] sm:$0xff] %vm876_vm5, %v875_v51 }
 0x4e1   :  { %1189 = shalt.err (!%p1186_p6)
}
 0x4e2   :  { %s1190_s18 = scalar_lea.hbm %s1401_s10, 128 }
 0x4e3   :  { %p1191_p7 = scmp.ne.s32.totalorder %s1401_s10, %s1190_s18  ;;  %p1194_p8 = scmp.lt.u32.totalorder %s1190_s18, %s1401_s10 }
 0x4e5   :  { %p1196_p9 = pnand %p1194_p8, %p1191_p7 }
 0x4e7   :  { %1199 = shalt.err (!%p1196_p9)
}
 0x4e8   :  { %887 = dma.vmem_to_hbm [thread:$0]  %s885_s16, 128, %s1401_s10, [#allocation4]  }
 0x4e9   :  { %1204 = dma.done.wait [#allocation4], 128  }
 0x4ea   :  { %1205 = vsyncadd [#allocation4], 4294967168 }
 0x4eb   :  { %891 = vsyncpa [#allocation3], 1 }
 0x4ec   :  { %892 = vsyncpa [#allocation6], 1 }
 0x4ed   :  { %893 = vsyncpa [#allocation4], 1 }

</bundles_post_ra>
